<compile_context>
chip_gen: v5e
topology: v5e:2x2
jax: 0.10.0
libtpu: 0.0.40
codegen_flags: <defaults>
</compile_context>

<pallas_src>
import functools
import math

import jax
import jax.numpy as jnp
from jax.experimental import pallas as pl
from jax.experimental.pallas import tpu as pltpu

LANE = 128
SUBLANE_BF16 = 16          # bf16 vregs hold [16, 128]
TB_MAX = 256               # cap batch tile so the grid has >= 2 steps when B > 256 (v7x megacore)
COMPUTE_DTYPE = jnp.bfloat16  # matmul input dtype; accumulation stays f32


def _round_up(x: int, m: int) -> int:
    return (x + m - 1) // m * m


# --------------------------------------------------------------------------- kernel
def _make_mlp_kernel(n_hidden: int, use_gamma: bool, use_beta: bool):
    """Ref order: x, [gamma], [beta], (w, b) x (n_hidden + 2), out.

    Weights arrive pre-transposed as (in_pad, out_pad) bf16; biases as (1, out_pad)
    f32; gamma/beta as (1, hid_pad) f32.  x arrives bf16, already lane-padded.
    """
    n_act_layers = 1 + n_hidden   # Linears followed by ReLU (+ optional FiLM)

    def kernel(*refs):
        idx = 0
        x_ref = refs[idx]; idx += 1
        gamma = beta = None
        if use_gamma:
            gamma = refs[idx][...]; idx += 1      # (1, hid_pad) f32
        if use_beta:
            beta = refs[idx][...]; idx += 1       # (1, hid_pad) f32

        wb = []
        for _ in range(n_act_layers + 1):
            wb.append((refs[idx], refs[idx + 1])); idx += 2
        out_ref = refs[idx]

        h = x_ref[...]                            # bf16 (tb, in_pad)
        for li in range(n_act_layers):
            w_ref, b_ref = wb[li]
            acc = jnp.dot(h, w_ref[...], preferred_element_type=jnp.float32)
            acc = acc + b_ref[...]
            if gamma is not None:                 # FiLM scale: (1, hid) implicit broadcast
                acc = acc * gamma
            if beta is not None:                  # FiLM shift
                acc = acc + beta
            h = jnp.maximum(acc, 0.0).astype(COMPUTE_DTYPE)   # nn.ReLU()

        w_ref, b_ref = wb[-1]
        y = jnp.dot(h, w_ref[...], preferred_element_type=jnp.float32) + b_ref[...]
        out_ref[...] = y.astype(out_ref.dtype)    # final_activation = nn.Identity()

    return kernel


# --------------------------------------------------------------------------- init / prep
def kaiming_uniform(key, out_f, in_f, dtype=jnp.float32):
    # torch.nn.init.kaiming_uniform_(..., nonlinearity='relu'): bound = sqrt(6 / fan_in)
    bound = math.sqrt(6.0 / in_f)
    return jax.random.uniform(key, (out_f, in_f), dtype, -bound, bound)


def linear_bias(key, out_f, in_f, dtype=jnp.float32):
    # default nn.Linear bias init: U(-1/sqrt(fan_in), 1/sqrt(fan_in))
    bound = 1.0 / math.sqrt(in_f)
    return jax.random.uniform(key, (out_f,), dtype, -bound, bound)


def init_mlp_params(key, n_input, n_output, dim_hidden, n_hidden):
    """Returns list of (W, b) (PyTorch layout: W is (out_f, in_f))."""
    params = []
    dims = [(n_input, dim_hidden)] + [(dim_hidden, dim_hidden)] * n_hidden
    for in_f, out_f in dims:
        key, kw, kb = jax.random.split(key, 3)
        params.append((kaiming_uniform(kw, out_f, in_f), linear_bias(kb, out_f, in_f)))
    key, kw, kb = jax.random.split(key, 3)
    params.append((kaiming_uniform(kw, n_output, dim_hidden),
                   linear_bias(kb, n_output, dim_hidden)))
    return params


def prepare_params(params):
    """ONE-TIME weight prep (keep the result; do not redo per forward call).

    Transposes each (out_f, in_f) weight to (in_f, out_f), zero-pads every feature
    dim to a multiple of 128, casts weights to bf16 and biases to (1, out_pad) f32.
    Returns (prepared_flat, (n_input, dim_hidden, n_hidden, n_output)).
    """
    n_hidden = len(params) - 2
    n_input = params[0][0].shape[1]
    dim_hidden = params[0][0].shape[0]
    n_output = params[-1][0].shape[0]

    in_pad = _round_up(n_input, LANE)
    hid_pad = _round_up(dim_hidden, LANE)
    out_pad = _round_up(n_output, LANE)
    in_dims = [in_pad] + [hid_pad] * (n_hidden + 1)
    out_dims = [hid_pad] * (n_hidden + 1) + [out_pad]

    prepared = []
    for (w, b), ip, op in zip(params, in_dims, out_dims):
        wt = jnp.asarray(w, jnp.float32).T                       # (in_f, out_f)
        wt = jnp.pad(wt, ((0, ip - wt.shape[0]), (0, op - wt.shape[1])))
        prepared.append(wt.astype(COMPUTE_DTYPE))
        bp = jnp.pad(jnp.asarray(b, jnp.float32), (0, op - b.shape[0])).reshape(1, op)
        prepared.append(bp)
    return prepared, (n_input, dim_hidden, n_hidden, n_output)


# --------------------------------------------------------------------------- forward
def _vmem_cap_bytes() -> int:
    """Per-generation usable VMEM cap: physical capacity minus 1/8 headroom."""
    try:
        cap = int(getattr(pltpu.get_tpu_info(), "vmem_capacity_bytes", 64 * 1024 * 1024))
    except Exception:  # conservative fallback if the query is unavailable
        cap = 64 * 1024 * 1024
    return max(32 * 1024 * 1024, cap - cap // 8)


def _const_spec(shape):
    """VMEM-resident, single-buffered block (constant index_map across the grid)."""
    return pl.BlockSpec(shape, lambda i: (0, 0), pipeline_mode=pl.Buffered(1))


@functools.partial(jax.jit, static_argnames=("n_hidden", "n_output", "out_dtype"))
def mlp_forward(x, prepared_flat, n_hidden, n_output, gamma=None, beta=None,
                out_dtype=jnp.float32):
    """Fused Pallas MLP forward.  x: (B, n_input) -> (B, n_output) in out_dtype."""
    use_gamma = gamma is not None
    use_beta = beta is not None
    n_act_layers = 1 + n_hidden

    weights = [prepared_flat[2 * i] for i in range(n_act_layers + 1)]      # (ip, op) bf16
    biases = [prepared_flat[2 * i + 1] for i in range(n_act_layers + 1)]   # (1, op) f32
    in_dims = [int(w.shape[0]) for w in weights]
    out_dims = [int(w.shape[1]) for w in weights]
    in_pad, hid_pad, out_pad = in_dims[0], out_dims[0], out_dims[-1]

    B, n_input = x.shape

    # ---- batch tiling: 16-aligned (bf16 pack), <= TB_MAX, even split (no 2x over-pad) ----
    b16 = _round_up(B, SUBLANE_BF16)
    n_tiles = pl.cdiv(b16, TB_MAX)
    tb = _round_up(pl.cdiv(b16, n_tiles), SUBLANE_BF16)
    b_pad = _round_up(B, tb)
    grid = (b_pad // tb,)

    xp = jnp.pad(x.astype(COMPUTE_DTYPE), ((0, b_pad - B), (0, in_pad - n_input)))

    inputs = [xp]
    in_specs = [pl.BlockSpec((tb, in_pad), lambda i: (i, 0))]

    if use_gamma:
        g = jnp.asarray(gamma, jnp.float32).reshape(-1)
        g = jnp.pad(g, (0, hid_pad - g.shape[0])).reshape(1, hid_pad)
        inputs.append(g)
        in_specs.append(_const_spec((1, hid_pad)))
    if use_beta:
        bt = jnp.asarray(beta, jnp.float32).reshape(-1)
        bt = jnp.pad(bt, (0, hid_pad - bt.shape[0])).reshape(1, hid_pad)
        inputs.append(bt)
        in_specs.append(_const_spec((1, hid_pad)))

    for w, b in zip(weights, biases):
        inputs.append(w)
        inputs.append(b)
        in_specs.append(_const_spec(w.shape))   # weights stay VMEM-resident, 1 buffer
        in_specs.append(_const_spec(b.shape))

    out_spec = pl.BlockSpec((tb, out_pad), lambda i: (i, 0))

    # ---- cost estimate (advisory; correct bytes_accessed helps XLA schedule neighbors) ----
    out_itemsize = jnp.dtype(out_dtype).itemsize
    flops = 2 * b_pad * sum(ip * op for ip, op in zip(in_dims, out_dims))
    bytes_accessed = (
        b_pad * in_pad * 2                                            # x read (bf16)
        + sum(ip * op * 2 for ip, op in zip(in_dims, out_dims))       # weights (bf16)
        + sum(op * 4 for op in out_dims)                              # biases (f32)
        + hid_pad * 4 * (int(use_gamma) + int(use_beta))              # FiLM params
        + b_pad * out_pad * out_itemsize                              # output write
    )
    cost = pl.CostEstimate(flops=int(flops), transcendentals=0,
                           bytes_accessed=int(bytes_accessed))

    # ---- VMEM budget: single-buffered weights + double-buffered x/out tiles + live acts ----
    weight_bytes = sum(ip * op * 2 for ip, op in zip(in_dims, out_dims))
    bias_bytes = sum(op * 4 for op in out_dims)
    film_bytes = hid_pad * 4 * (int(use_gamma) + int(use_beta))
    tile_bytes = 2 * tb * in_pad * 2 + 2 * tb * out_pad * out_itemsize
    act_bytes = tb * hid_pad * (2 + 4 + 4)          # bf16 h + f32 acc + one f32 temp
    vmem_needed = weight_bytes + bias_bytes + film_bytes + tile_bytes + act_bytes + (2 << 20)
    vmem_limit = int(min(max(vmem_needed * 5 // 4, 32 * 1024 * 1024), _vmem_cap_bytes()))
    # TODO(synk): if single-buffered weights still exceed the per-generation cap
    # (~56 MiB on v7x, ~112 MiB on v5e/v6e), stream the large layers' weights from HBM
    # (memory_space=pl.ANY) via an emit_pipeline K/N-tiled inner loop instead of
    # keeping them fully VMEM-resident.

    out = pl.pallas_call(
        _make_mlp_kernel(n_hidden, use_gamma, use_beta),
        out_shape=jax.ShapeDtypeStruct((b_pad, out_pad), out_dtype),
        grid_spec=pltpu.PrefetchScalarGridSpec(
            num_scalar_prefetch=0,
            grid=grid,
            in_specs=in_specs,
            out_specs=out_spec,
        ),
        compiler_params=pltpu.CompilerParams(
            dimension_semantics=("parallel",),
            vmem_limit_bytes=vmem_limit,
        ),
        cost_estimate=cost,
    )(*inputs)

    return out[:B, :n_output]


# --------------------------------------------------------------------------- reference
def mlp_reference(x, params, gamma=None, beta=None, compute_dtype=jnp.float32):
    """Pure-JAX reference mirroring the kernel numerics (bf16 matmul, f32 accum)."""
    h = x.astype(compute_dtype)
    for (w, b) in params[:-1]:
        acc = jnp.dot(h, w.T.astype(compute_dtype),
                      preferred_element_type=jnp.float32) + b
        if gamma is not None:
            acc = acc * gamma
        if beta is not None:
            acc = acc + beta
        h = jnp.maximum(acc, 0.0).astype(compute_dtype)
    w, b = params[-1]
    return jnp.dot(h, w.T.astype(compute_dtype),
                   preferred_element_type=jnp.float32) + b


if __name__ == "__main__":
    key = jax.random.PRNGKey(0)

    # Small shapes consistent with the module's forward: x is (batch, n_input)
    batch, n_input, dim_hidden, n_hidden, n_output = 8, 16, 32, 1, 4

    kx, kp = jax.random.split(key)
    x = jax.random.normal(kx, (batch, n_input), jnp.float32)
    params = init_mlp_params(kp, n_input, n_output, dim_hidden, n_hidden)
    prepared, (_, dh, nh, no) = prepare_params(params)   # one-time weight prep

    # default path (gamma=None, beta=None)
    out = jax.block_until_ready(mlp_forward(x, prepared, n_hidden=nh, n_output=no))
    ref = mlp_reference(x, params, compute_dtype=COMPUTE_DTYPE)
    assert out.shape == (batch, n_output)
    assert jnp.allclose(out, ref, atol=1e-2, rtol=1e-2), "mismatch vs reference"

    # FiLM-conditioned path (gamma, beta provided)
    kg, kb = jax.random.split(kx)
    gamma = jax.random.normal(kg, (dim_hidden,), jnp.float32)
    beta = jax.random.normal(kb, (dim_hidden,), jnp.float32)
    out_film = jax.block_until_ready(
        mlp_forward(x, prepared, n_hidden=nh, n_output=no, gamma=gamma, beta=beta))
    ref_film = mlp_reference(x, params, gamma=gamma, beta=beta,
                             compute_dtype=COMPUTE_DTYPE)
    assert jnp.allclose(out_film, ref_film, atol=1e-2, rtol=1e-2), "FiLM mismatch"

    # multi-tile batch path: B > 256 -> grid of >= 2 "parallel" steps (v7x megacore)
    x_big = jax.random.normal(jax.random.fold_in(kx, 1), (300, n_input), jnp.float32)
    out_big = jax.block_until_ready(mlp_forward(x_big, prepared, n_hidden=nh, n_output=no))
    ref_big = mlp_reference(x_big, params, compute_dtype=COMPUTE_DTYPE)
    assert out_big.shape == (300, n_output)
    assert jnp.allclose(out_big, ref_big, atol=1e-2, rtol=1e-2), "big-batch mismatch"

    print("KERNEL_OK")
</pallas_src>

<mosaic_0001>
module attributes {stable_mosaic.version = 11 : i64} {
  func.func @kernel(%arg0: i32, %arg1: memref<16x128xbf16, #tpu.memory_space<vmem>>, %arg2: memref<128x128xbf16, #tpu.memory_space<vmem>>, %arg3: memref<1x128xf32, #tpu.memory_space<vmem>>, %arg4: memref<128x128xbf16, #tpu.memory_space<vmem>>, %arg5: memref<1x128xf32, #tpu.memory_space<vmem>>, %arg6: memref<128x128xbf16, #tpu.memory_space<vmem>>, %arg7: memref<1x128xf32, #tpu.memory_space<vmem>>, %arg8: memref<16x128xf32, #tpu.memory_space<vmem>>) attributes {dimension_semantics = [#tpu.dimension_semantics<parallel>], iteration_bounds = array<i64: 1>, scalar_prefetch = 0 : i64, scratch_operands = 0 : i64, tpu.core_type = #tpu.core_type<tc>, window_params = [{transform_indices = @transform_0, window_bounds = array<i64: 16, 128>}, {pipeline_mode = #tpu.pipeline_mode<synchronous>, transform_indices = @transform_1, window_bounds = array<i64: 128, 128>}, {pipeline_mode = #tpu.pipeline_mode<synchronous>, transform_indices = @transform_2, window_bounds = array<i64: 1, 128>}, {pipeline_mode = #tpu.pipeline_mode<synchronous>, transform_indices = @transform_3, window_bounds = array<i64: 128, 128>}, {pipeline_mode = #tpu.pipeline_mode<synchronous>, transform_indices = @transform_4, window_bounds = array<i64: 1, 128>}, {pipeline_mode = #tpu.pipeline_mode<synchronous>, transform_indices = @transform_5, window_bounds = array<i64: 128, 128>}, {pipeline_mode = #tpu.pipeline_mode<synchronous>, transform_indices = @transform_6, window_bounds = array<i64: 1, 128>}, {transform_indices = @transform_7, window_bounds = array<i64: 16, 128>}]} {
    %c0 = arith.constant 0 : index
    %c0_0 = arith.constant 0 : index
    %0 = vector.load %arg1[%c0, %c0_0] : memref<16x128xbf16, #tpu.memory_space<vmem>>, vector<16x128xbf16>
    %c0_1 = arith.constant 0 : index
    %c0_2 = arith.constant 0 : index
    %1 = vector.load %arg2[%c0_1, %c0_2] : memref<128x128xbf16, #tpu.memory_space<vmem>>, vector<128x128xbf16>
    %cst = arith.constant dense<0.000000e+00> : vector<16x128xf32>
    %2 = tpu.matmul %0, %1, %cst {dimension_numbers = #tpu.dot_dimension_numbers<[1], [0], [0], [1], [0, 0, 1, 1], [], []>} : vector<16x128xbf16>, vector<128x128xbf16>, vector<16x128xf32> -> vector<16x128xf32>
    %c0_3 = arith.constant 0 : index
    %c0_4 = arith.constant 0 : index
    %3 = vector.load %arg3[%c0_3, %c0_4] : memref<1x128xf32, #tpu.memory_space<vmem>>, vector<1x128xf32>
    %4 = vector.broadcast %3 : vector<1x128xf32> to vector<16x128xf32>
    %5 = arith.addf %2, %4 : vector<16x128xf32>
    %cst_5 = arith.constant 0.000000e+00 : f32
    %6 = vector.broadcast %cst_5 : f32 to vector<16x128xf32>
    %7 = arith.maximumf %5, %6 : vector<16x128xf32>
    %8 = arith.truncf %7 : vector<16x128xf32> to vector<16x128xbf16>
    %c0_6 = arith.constant 0 : index
    %c0_7 = arith.constant 0 : index
    %9 = vector.load %arg4[%c0_6, %c0_7] : memref<128x128xbf16, #tpu.memory_space<vmem>>, vector<128x128xbf16>
    %cst_8 = arith.constant dense<0.000000e+00> : vector<16x128xf32>
    %10 = tpu.matmul %8, %9, %cst_8 {dimension_numbers = #tpu.dot_dimension_numbers<[1], [0], [0], [1], [0, 0, 1, 1], [], []>} : vector<16x128xbf16>, vector<128x128xbf16>, vector<16x128xf32> -> vector<16x128xf32>
    %c0_9 = arith.constant 0 : index
    %c0_10 = arith.constant 0 : index
    %11 = vector.load %arg5[%c0_9, %c0_10] : memref<1x128xf32, #tpu.memory_space<vmem>>, vector<1x128xf32>
    %12 = vector.broadcast %11 : vector<1x128xf32> to vector<16x128xf32>
    %13 = arith.addf %10, %12 : vector<16x128xf32>
    %cst_11 = arith.constant 0.000000e+00 : f32
    %14 = vector.broadcast %cst_11 : f32 to vector<16x128xf32>
    %15 = arith.maximumf %13, %14 : vector<16x128xf32>
    %16 = arith.truncf %15 : vector<16x128xf32> to vector<16x128xbf16>
    %c0_12 = arith.constant 0 : index
    %c0_13 = arith.constant 0 : index
    %17 = vector.load %arg6[%c0_12, %c0_13] : memref<128x128xbf16, #tpu.memory_space<vmem>>, vector<128x128xbf16>
    %cst_14 = arith.constant dense<0.000000e+00> : vector<16x128xf32>
    %18 = tpu.matmul %16, %17, %cst_14 {dimension_numbers = #tpu.dot_dimension_numbers<[1], [0], [0], [1], [0, 0, 1, 1], [], []>} : vector<16x128xbf16>, vector<128x128xbf16>, vector<16x128xf32> -> vector<16x128xf32>
    %c0_15 = arith.constant 0 : index
    %c0_16 = arith.constant 0 : index
    %19 = vector.load %arg7[%c0_15, %c0_16] : memref<1x128xf32, #tpu.memory_space<vmem>>, vector<1x128xf32>
    %20 = vector.broadcast %19 : vector<1x128xf32> to vector<16x128xf32>
    %21 = arith.addf %18, %20 : vector<16x128xf32>
    %c0_17 = arith.constant 0 : index
    %c0_18 = arith.constant 0 : index
    %22 = vector.load %arg8[%c0_17, %c0_18] : memref<16x128xf32, #tpu.memory_space<vmem>>, vector<16x128xf32>
    tpu.vector_store %arg8[%c0_17, %c0_18], %21 {strides = array<i32>} : memref<16x128xf32, #tpu.memory_space<vmem>>, vector<16x128xf32>,
    return
  }
  func.func @transform_0(%arg0: i32) -> (i32, i32) {
    %c0_i32 = arith.constant 0 : i32
    %c0_i32_0 = arith.constant 0 : i32
    return %arg0, %c0_i32 : i32, i32
  }
  func.func @transform_1(%arg0: i32) -> (i32, i32) {
    %c0_i32 = arith.constant 0 : i32
    %c0_i32_0 = arith.constant 0 : i32
    %c0_i32_1 = arith.constant 0 : i32
    return %c0_i32, %c0_i32_0 : i32, i32
  }
  func.func @transform_2(%arg0: i32) -> (i32, i32) {
    %c0_i32 = arith.constant 0 : i32
    %c0_i32_0 = arith.constant 0 : i32
    %c0_i32_1 = arith.constant 0 : i32
    return %c0_i32, %c0_i32_0 : i32, i32
  }
  func.func @transform_3(%arg0: i32) -> (i32, i32) {
    %c0_i32 = arith.constant 0 : i32
    %c0_i32_0 = arith.constant 0 : i32
    %c0_i32_1 = arith.constant 0 : i32
    return %c0_i32, %c0_i32_0 : i32, i32
  }
  func.func @transform_4(%arg0: i32) -> (i32, i32) {
    %c0_i32 = arith.constant 0 : i32
    %c0_i32_0 = arith.constant 0 : i32
    %c0_i32_1 = arith.constant 0 : i32
    return %c0_i32, %c0_i32_0 : i32, i32
  }
  func.func @transform_5(%arg0: i32) -> (i32, i32) {
    %c0_i32 = arith.constant 0 : i32
    %c0_i32_0 = arith.constant 0 : i32
    %c0_i32_1 = arith.constant 0 : i32
    return %c0_i32, %c0_i32_0 : i32, i32
  }
  func.func @transform_6(%arg0: i32) -> (i32, i32) {
    %c0_i32 = arith.constant 0 : i32
    %c0_i32_0 = arith.constant 0 : i32
    %c0_i32_1 = arith.constant 0 : i32
    return %c0_i32, %c0_i32_0 : i32, i32
  }
  func.func @transform_7(%arg0: i32) -> (i32, i32) {
    %c0_i32 = arith.constant 0 : i32
    %c0_i32_0 = arith.constant 0 : i32
    return %arg0, %c0_i32 : i32, i32
  }
}

</mosaic_0001>

<bundles_post_ra>
// kernel: mlp_forward.1
= control target key start
LH: loop header
LB: loop body
LE: loop exit
PB: predicated region body
PF: predicated region fallthrough
CT: control target
= control target key end

     0   :  { %12 = vsyncpa [#allocation3], 0  ;;  %s622_s0 = inlined_call_operand.vmem [shape: bf16[16,128], index: 0, kind: input, shape index: {}]   ;;  %s623_s1 = inlined_call_operand.hbm [shape: bf16[128,128], index: 1, kind: input, shape index: {}]   ;;  %s624_s2 = inlined_call_operand.vmem [shape: f32[1,128], index: 2, kind: input, shape index: {}]   ;;  %s625_s3 = inlined_call_operand.hbm [shape: bf16[128,128], index: 3, kind: input, shape index: {}]   ;;  %s626_s4 = inlined_call_operand.vmem [shape: f32[1,128], index: 4, kind: input, shape index: {}]   ;;  %s627_s5 = inlined_call_operand.hbm [shape: bf16[128,128], index: 5, kind: input, shape index: {}]   ;;  %s628_s6 = inlined_call_operand.vmem [shape: f32[1,128], index: 6, kind: input, shape index: {}]   ;;  %s629_s7 = inlined_call_operand.vmem [shape: f32[16,128], index: 7, kind: output, shape index: {}]  }
   0x1   :  { %13 = vsyncpa [#allocation5], 0  ;;  %s35_s26 = sshll.u32 %s625_s3, 4  ;;  %s550_s27 = smov [#allocation4]   ;;  %s36_s26 = int_to_ptr.hbm [resolvable:$true] %s35_s26 }
   0x2   :  { %s37_s28 = sshll.u32 %s550_s27, 4  ;;  %s20_s8 = sshll.u32 %s623_s1, 4  ;;  %s38_s28 = int_to_ptr.vmem [resolvable:$true] %s37_s28  ;;  %s21_s8 = int_to_ptr.hbm [resolvable:$true] %s20_s8 }
   0x3   :  { %s551_s9 = smov 64   ;;  %s552_s10 = smov 4  }
   0x4   :  { %43 = dma.hbm_to_vmem [thread:$0]  %s36_s26, 1024, %s38_s28, [#allocation5], %s551_s9, %s551_s9, %s552_s10  }
   0x5   :  { %s553_s11 = smov [#allocation2]   ;;  %s50_s15 = sshll.u32 %s627_s5, 4  ;;  %s51_s15 = int_to_ptr.hbm [resolvable:$true] %s50_s15 }
   0x6   :  { %s22_s12 = sshll.u32 %s553_s11, 4  ;;  %s554_s3 = smov [#allocation6]   ;;  %s23_s12 = int_to_ptr.vmem [resolvable:$true] %s22_s12 }
   0x7   :  { %28 = dma.hbm_to_vmem [thread:$0]  %s21_s8, 1024, %s23_s12, [#allocation3], %s551_s9, %s551_s9, %s552_s10  }
   0x8   :  { %s52_s16 = sshll.u32 %s554_s3, 4  ;;  %s53_s16 = int_to_ptr.vmem [resolvable:$true] %s52_s16 }
   0x9   :  { %58 = dma.hbm_to_vmem [thread:$0]  %s51_s15, 1024, %s53_s16, [#allocation5], %s551_s9, %s551_s9, %s552_s10  }
   0xa   :  { %546 = dma.done.wait [#allocation3], 1024  }
   0xb   :  { %547 = vsyncadd [#allocation3], 4294966272 }
   0xc   :  { %548 = dma.done.wait [#allocation5], 2048  }
   0xd   :  { %549 = vsyncadd [#allocation5], 4294965248  ;;  %v449_v0 = vld [vmem:[#allocation2 + $0x38] sm:$0xff]  ;;  %v448_v1 = vld [vmem:[#allocation2 + $0x30] sm:$0xff] }
   0xe   :  { %149 = vmatpush.bf16.msra.mxu0 %v449_v0  ;;  %v457_v2 = vld [vmem:[#allocation4 + $0x38] sm:$0xff]  ;;  %v456_v3 = vld [vmem:[#allocation4 + $0x30] sm:$0xff]  ;;  %v447_v4 = vld [vmem:[#allocation2 + $0x28] sm:$0xff] }
   0xf   :  { %234 = vmatpush.bf16.msra.mxu1 %v457_v2  ;;  %v455_v5 = vld [vmem:[#allocation4 + $0x28] sm:$0xff]  ;;  %v446_v6 = vld [vmem:[#allocation2 + $0x20] sm:$0xff]  ;;  %v445_v8 = vld [vmem:[#allocation2 + $0x18] sm:$0xff] }
  0x10   :  { %v454_v7 = vld [vmem:[#allocation4 + $0x20] sm:$0xff]  ;;  %v444_v9 = vld [vmem:[#allocation2 + $0x10] sm:$0xff]  ;;  %v443_v10 = vld [vmem:[#allocation2 + $0x8] sm:$0xff] }
  0x11   :  { %v442_v11 = vld [vmem:[#allocation2] sm:$0xff]  ;;  %v453_v13 = vld [vmem:[#allocation4 + $0x18] sm:$0xff]  ;;  %v452_v14 = vld [vmem:[#allocation4 + $0x10] sm:$0xff] }
  0x12   :  { %150 = vmatpush.bf16.msra.mxu0 %v448_v1  ;;  %v441_v12 = vld [vmem:[%s622_s0] sm:$0xff]  ;;  %v451_v15 = vld [vmem:[#allocation4 + $0x8] sm:$0xff]  ;;  %v465_v17 = vld [vmem:[#allocation6 + $0x38] sm:$0xff] }
  0x13   :  { %235 = vmatpush.bf16.msra.mxu1 %v456_v3  ;;  %v450_v16 = vld [vmem:[#allocation4] sm:$0xff]  ;;  %319 = vmatpush.bf16.msra.mxu2 %v465_v17  ;;  %v464_v18 = vld [vmem:[#allocation6 + $0x30] sm:$0xff]  ;;  %v463_v19 = vld [vmem:[#allocation6 + $0x28] sm:$0xff] }
  0x14   :  { %v462_v20 = vld [vmem:[#allocation6 + $0x20] sm:$0xff]  ;;  %v461_v29 = vld [vmem:[#allocation6 + $0x18] sm:$0xff]  ;;  %v460_v30 = vld [vmem:[#allocation6 + $0x10] sm:$0xff] }
  0x15   :  { %v471_v22 = vld [vmem:[%s624_s2] ss:$0 sm:$0xff]  ;;  %v459_v31 = vld [vmem:[#allocation6 + $0x8] sm:$0xff] }
  0x16   :  { %151 = vmatpush.bf16.msra.mxu0 %v447_v4  ;;  %v458_v32 = vld [vmem:[#allocation6] sm:$0xff] }
  0x17   :  { %236 = vmatpush.bf16.msra.mxu1 %v455_v5  ;;  %320 = vmatpush.bf16.msra.mxu2 %v464_v18  ;;  %v472_v34 = vld [vmem:[%s626_s4] ss:$0 sm:$0xff] }
  0x18   :  { %v473_v41 = vld [vmem:[%s628_s6] ss:$0 sm:$0xff] }
  0x1a   :  { %152 = vmatpush.bf16.msra.mxu0 %v446_v6 }
  0x1b   :  { %237 = vmatpush.bf16.msra.mxu1 %v454_v7  ;;  %321 = vmatpush.bf16.msra.mxu2 %v463_v19 }
  0x1e   :  { %153 = vmatpush.bf16.msra.mxu0 %v445_v8 }
  0x1f   :  { %238 = vmatpush.bf16.msra.mxu1 %v453_v13  ;;  %322 = vmatpush.bf16.msra.mxu2 %v462_v20 }
  0x22   :  { %154 = vmatpush.bf16.msra.mxu0 %v444_v9 }
  0x23   :  { %239 = vmatpush.bf16.msra.mxu1 %v452_v14  ;;  %323 = vmatpush.bf16.msra.mxu2 %v461_v29 }
  0x26   :  { %155 = vmatpush.bf16.msra.mxu0 %v443_v10 }
  0x27   :  { %240 = vmatpush.bf16.msra.mxu1 %v451_v15  ;;  %324 = vmatpush.bf16.msra.mxu2 %v460_v30 }
  0x2a   :  { %156 = vmatpush.bf16.msra.mxu0 %v442_v11 }
  0x2b   :  { %241 = vmatpush.bf16.msra.mxu1 %v450_v16  ;;  %325 = vmatpush.bf16.msra.mxu2 %v459_v31 }
  0x2d   :  { %157 = vmatmul.bf16.vlgmr.msra.gmra.mxu0 %v441_v12 }
  0x2f   :  { %326 = vmatpush.bf16.msra.mxu2 %v458_v32 }
  0xaa   :  { %v158_v21 = vpop.f32.mrf.mxu0 }
  0xab   :  { %v159_v23 = vadd.f32 %v471_v22, %v158_v21 }
  0xad   :  { %v163_v26 = vmax.f32 %v159_v23, 0.0 }
  0xb2   :  { %v160_v24 = vpop.f32.mrf.mxu0 }
  0xb3   :  { %v161_v25 = vadd.f32 %v471_v22, %v160_v24 }
  0xb5   :  { %v164_v27 = vmax.f32 %v161_v25, 0.0 }
  0xb7   :  { %v165_v28 = vpack.c.bf16 %v164_v27, %v163_v26 }
  0xb9   :  { %242 = vmatmul.bf16.vlgmr.msra.gmra.mxu1 %v165_v28 }
 0x136   :  { %v243_v33 = vpop.f32.mrf.mxu1 }
 0x137   :  { %v244_v35 = vadd.f32 %v472_v34, %v243_v33 }
 0x139   :  { %v248_v38 = vmax.f32 %v244_v35, 0.0 }
 0x13e   :  { %v245_v36 = vpop.f32.mrf.mxu1 }
 0x13f   :  { %v246_v37 = vadd.f32 %v472_v34, %v245_v36 }
 0x141   :  { %v249_v39 = vmax.f32 %v246_v37, 0.0 }
 0x143   :  { %v250_v40 = vpack.c.bf16 %v249_v39, %v248_v38 }
 0x145   :  { %327 = vmatmul.bf16.vlgmr.msra.gmra.mxu2 %v250_v40 }
 0x1c8   :  { %v328_v42 = vpop.f32.mrf.mxu2 }
 0x1c9   :  { %v329_v43 = vadd.f32 %v473_v41, %v328_v42 }
 0x1cb   :  { %333 = vst [vmem:[%s629_s7] sm:$0xff] %v329_v43 }
 0x1d0   :  { %v330_v44 = vpop.f32.mrf.mxu2 }
 0x1d1   :  { %v331_v45 = vadd.f32 %v473_v41, %v330_v44 }
 0x1d3   :  { %334 = vst [vmem:[%s629_s7 + $0x8] sm:$0xff] %v331_v45 }
 0x1d4   :  { %339 = vsyncpa [#allocation3], 1 }
 0x1d5   :  { %340 = vsyncpa [#allocation5], 1 }

</bundles_post_ra>
